<compile_context>
chip_gen: v7x
topology: tpu7x:2x2x1
jax: 0.10.0
libtpu: 0.0.40
codegen_flags: <defaults>
</compile_context>

<pallas_src>
import jax
import jax.numpy as jnp
from jax import lax
from jax.experimental import pallas as pl
from jax.experimental.pallas import tpu as pltpu


# Feature sizes of the torch module: 8 -> 6 -> 4 -> 1.
D_IN, D_H1, D_H2, D_OUT = 8, 6, 4, 1

# Flat offsets of each parameter inside the packed (input-major) parameter table.
_W1_OFF = 0
_B1_OFF = _W1_OFF + D_IN * D_H1           # 48
_W2_OFF = _B1_OFF + D_H1                  # 54
_B2_OFF = _W2_OFF + D_H1 * D_H2           # 78
_W3_OFF = _B2_OFF + D_H2                  # 82
_B3_OFF = _W3_OFF + D_H2 * D_OUT          # 86
_N_PARAMS = _B3_OFF + D_OUT               # 87

LANES = 128            # lane width of a vreg
SUB = 8                # sublanes per vreg (f32)
MAX_ROW_BLOCK = 256    # rows of 128 lanes per grid step -> 1 MiB of x per block


def _cdiv(a, b):
    return -(-a // b)


def _round_up(a, b):
    return _cdiv(a, b) * b


def mlp_kernel(w_ref, x_ref, o_ref):
    """w_ref: (87, 8, 128) pre-splatted params (VMEM, resident across the grid).
       x_ref: (8, row_block, 128) f32 -- batch slots, feature-major, sublane+lane dense.
       o_ref: (row_block, 128) f32 -- lane/sublane-dense output slab."""
    n_chunks = x_ref.shape[1] // SUB          # static

    def layer(rows, n_in, n_out, w_off, b_off):
        outs = []
        for j in range(n_out):                                   # unrolled VPU MACs
            acc = rows[0] * w_ref[w_off + j]                     # (8,128) * splat tile
            for i in range(1, n_in):
                acc = acc + rows[i] * w_ref[w_off + i * n_out + j]
            outs.append(jax.nn.sigmoid(acc + w_ref[b_off + j]))  # EUP sigmoid
        return outs

    def chunk(c, carry):
        r0 = pl.multiple_of(c * SUB, SUB)
        xs = [x_ref[f, pl.ds(r0, SUB), :] for f in range(D_IN)]  # 8 x (8,128) tiles
        h1 = layer(xs, D_IN, D_H1, _W1_OFF, _B1_OFF)             # 6 tiles
        h2 = layer(h1, D_H1, D_H2, _W2_OFF, _B2_OFF)             # 4 tiles
        h3 = layer(h2, D_H2, D_OUT, _W3_OFF, _B3_OFF)            # 1 tile
        o_ref[pl.ds(r0, SUB), :] = h3[0]                         # dense unmasked vst
        return carry

    # n_chunks <= 32 by construction -> full unroll gives the scheduler visibility.
    lax.fori_loop(0, n_chunks, chunk, 0, unroll=True)


@jax.jit
def mlp_forward(x, w1, b1, w2, b2, w3, b3):
    """x: (B, 8). w*: torch nn.Linear layout (out_features, in_features); b*: (out,)."""
    B = x.shape[0]

    # Batch slots laid out as (rows, 128); rows padded to a multiple of 8 sublanes.
    rows = _round_up(_cdiv(B, LANES), SUB)
    n_blocks = max(1, _cdiv(rows, MAX_ROW_BLOCK))
    if rows >= 2 * SUB:
        n_blocks = max(n_blocks, 2)                   # v7x: keep both TensorCores busy
    row_block = _round_up(_cdiv(rows, n_blocks), SUB)
    R = n_blocks * row_block

    # Feature-major, tail-padded, fused into this jit (single pass over the input).
    x_t = jnp.pad(x.astype(jnp.float32).T, ((0, 0), (0, R * LANES - B)))
    x_t = x_t.reshape(D_IN, R, LANES)

    # Pack params input-major ((in, out) row-major) and pre-splat each scalar to (8,128)
    # so in-kernel weight reads are plain vector loads (load slot), not VALU splats.
    params = jnp.concatenate([
        w1.T.reshape(-1), b1.reshape(-1),
        w2.T.reshape(-1), b2.reshape(-1),
        w3.T.reshape(-1), b3.reshape(-1)]).astype(jnp.float32)
    w_tab = jnp.broadcast_to(params[:, None, None], (_N_PARAMS, SUB, LANES))

    out = pl.pallas_call(
        mlp_kernel,
        out_shape=jax.ShapeDtypeStruct((R, LANES), jnp.float32),
        grid=(n_blocks,),
        in_specs=[
            pl.BlockSpec((_N_PARAMS, SUB, LANES), lambda i: (0, 0, 0)),   # resident
            pl.BlockSpec((D_IN, row_block, LANES), lambda i: (0, i, 0)),  # x row-block
        ],
        out_specs=pl.BlockSpec((row_block, LANES), lambda i: (i, 0)),
        compiler_params=pltpu.CompilerParams(
            dimension_semantics=("parallel",)),       # shard row-blocks across v7x TCs
    )(w_tab, x_t)

    return out.reshape(-1)[:B].reshape(B, 1)


def init_linear(key, fan_in, fan_out):
    # torch.nn.Linear default init, torch layout: W (out, in), b (out,).
    kw, kb = jax.random.split(key)
    bound = 1.0 / (fan_in ** 0.5)
    w = jax.random.uniform(kw, (fan_out, fan_in), jnp.float32, -bound, bound)
    b = jax.random.uniform(kb, (fan_out,), jnp.float32, -bound, bound)
    return w, b


if __name__ == "__main__":
    key = jax.random.PRNGKey(0)
    kx, k1, k2, k3 = jax.random.split(key, 4)

    w1, b1 = init_linear(k1, D_IN, D_H1)
    w2, b2 = init_linear(k2, D_H1, D_H2)
    w3, b3 = init_linear(k3, D_H2, D_OUT)

    def reference(xv):
        h = jax.nn.sigmoid(xv @ w1.T + b1)
        h = jax.nn.sigmoid(h @ w2.T + b2)
        return jax.nn.sigmoid(h @ w3.T + b3)

    ok = True
    # Small demo batch (single block) + a batch that exercises the multi-block,
    # multi-chunk path.
    for batch in (8, 3000):
        x = jax.random.normal(jax.random.fold_in(kx, batch), (batch, D_IN), jnp.float32)
        out = mlp_forward(x, w1, b1, w2, b2, w3, b3)
        jax.block_until_ready(out)
        ref = reference(x)
        ok = ok and (out.shape == (batch, 1))
        ok = ok and bool(jnp.allclose(out, ref, atol=1e-5, rtol=1e-5))
    assert ok, "mismatch vs reference"

    print("KERNEL_OK")
</pallas_src>

<mosaic_0001>
module attributes {stable_mosaic.version = 11 : i64} {
  func.func @mlp_kernel(%arg0: i32, %arg1: memref<87x8x128xf32, #tpu.memory_space<vmem>>, %arg2: memref<8x8x128xf32, #tpu.memory_space<vmem>>, %arg3: memref<8x128xf32, #tpu.memory_space<vmem>>) attributes {dimension_semantics = [#tpu.dimension_semantics<parallel>], iteration_bounds = array<i64: 1>, scalar_prefetch = 0 : i64, scratch_operands = 0 : i64, tpu.core_type = #tpu.core_type<tc>, window_params = [{pipeline_mode = #tpu.pipeline_mode<synchronous>, transform_indices = @transform_0, window_bounds = array<i64: 87, 8, 128>}, {transform_indices = @transform_1, window_bounds = array<i64: 8, 8, 128>}, {transform_indices = @transform_2, window_bounds = array<i64: 8, 128>}]} {
    %c0_i32 = arith.constant 0 : i32
    %c8_i32 = arith.constant 8 : i32
    %0 = arith.muli %c0_i32, %c8_i32 : i32
    %1 = tpu.assume_multiple %0, 8 : i32
    %c0 = arith.constant 0 : index
    %2 = arith.index_cast %1 : i32 to index
    %c0_0 = arith.constant 0 : index
    %3 = vector.load %arg2[%c0, %2, %c0_0] : memref<8x8x128xf32, #tpu.memory_space<vmem>>, vector<1x8x128xf32>
    %4 = vector.shape_cast %3 : vector<1x8x128xf32> to vector<8x128xf32>
    %c1 = arith.constant 1 : index
    %5 = arith.index_cast %1 : i32 to index
    %c0_1 = arith.constant 0 : index
    %6 = vector.load %arg2[%c1, %5, %c0_1] : memref<8x8x128xf32, #tpu.memory_space<vmem>>, vector<1x8x128xf32>
    %7 = vector.shape_cast %6 : vector<1x8x128xf32> to vector<8x128xf32>
    %c2 = arith.constant 2 : index
    %8 = arith.index_cast %1 : i32 to index
    %c0_2 = arith.constant 0 : index
    %9 = vector.load %arg2[%c2, %8, %c0_2] : memref<8x8x128xf32, #tpu.memory_space<vmem>>, vector<1x8x128xf32>
    %10 = vector.shape_cast %9 : vector<1x8x128xf32> to vector<8x128xf32>
    %c3 = arith.constant 3 : index
    %11 = arith.index_cast %1 : i32 to index
    %c0_3 = arith.constant 0 : index
    %12 = vector.load %arg2[%c3, %11, %c0_3] : memref<8x8x128xf32, #tpu.memory_space<vmem>>, vector<1x8x128xf32>
    %13 = vector.shape_cast %12 : vector<1x8x128xf32> to vector<8x128xf32>
    %c4 = arith.constant 4 : index
    %14 = arith.index_cast %1 : i32 to index
    %c0_4 = arith.constant 0 : index
    %15 = vector.load %arg2[%c4, %14, %c0_4] : memref<8x8x128xf32, #tpu.memory_space<vmem>>, vector<1x8x128xf32>
    %16 = vector.shape_cast %15 : vector<1x8x128xf32> to vector<8x128xf32>
    %c5 = arith.constant 5 : index
    %17 = arith.index_cast %1 : i32 to index
    %c0_5 = arith.constant 0 : index
    %18 = vector.load %arg2[%c5, %17, %c0_5] : memref<8x8x128xf32, #tpu.memory_space<vmem>>, vector<1x8x128xf32>
    %19 = vector.shape_cast %18 : vector<1x8x128xf32> to vector<8x128xf32>
    %c6 = arith.constant 6 : index
    %20 = arith.index_cast %1 : i32 to index
    %c0_6 = arith.constant 0 : index
    %21 = vector.load %arg2[%c6, %20, %c0_6] : memref<8x8x128xf32, #tpu.memory_space<vmem>>, vector<1x8x128xf32>
    %22 = vector.shape_cast %21 : vector<1x8x128xf32> to vector<8x128xf32>
    %c7 = arith.constant 7 : index
    %23 = arith.index_cast %1 : i32 to index
    %c0_7 = arith.constant 0 : index
    %24 = vector.load %arg2[%c7, %23, %c0_7] : memref<8x8x128xf32, #tpu.memory_space<vmem>>, vector<1x8x128xf32>
    %25 = vector.shape_cast %24 : vector<1x8x128xf32> to vector<8x128xf32>
    %c0_8 = arith.constant 0 : index
    %c0_9 = arith.constant 0 : index
    %c0_10 = arith.constant 0 : index
    %26 = vector.load %arg1[%c0_8, %c0_9, %c0_10] : memref<87x8x128xf32, #tpu.memory_space<vmem>>, vector<1x8x128xf32>
    %27 = vector.shape_cast %26 : vector<1x8x128xf32> to vector<8x128xf32>
    %28 = arith.mulf %4, %27 : vector<8x128xf32>
    %c6_11 = arith.constant 6 : index
    %c0_12 = arith.constant 0 : index
    %c0_13 = arith.constant 0 : index
    %29 = vector.load %arg1[%c6_11, %c0_12, %c0_13] : memref<87x8x128xf32, #tpu.memory_space<vmem>>, vector<1x8x128xf32>
    %30 = vector.shape_cast %29 : vector<1x8x128xf32> to vector<8x128xf32>
    %31 = arith.mulf %7, %30 : vector<8x128xf32>
    %32 = arith.addf %28, %31 : vector<8x128xf32>
    %c12 = arith.constant 12 : index
    %c0_14 = arith.constant 0 : index
    %c0_15 = arith.constant 0 : index
    %33 = vector.load %arg1[%c12, %c0_14, %c0_15] : memref<87x8x128xf32, #tpu.memory_space<vmem>>, vector<1x8x128xf32>
    %34 = vector.shape_cast %33 : vector<1x8x128xf32> to vector<8x128xf32>
    %35 = arith.mulf %10, %34 : vector<8x128xf32>
    %36 = arith.addf %32, %35 : vector<8x128xf32>
    %c18 = arith.constant 18 : index
    %c0_16 = arith.constant 0 : index
    %c0_17 = arith.constant 0 : index
    %37 = vector.load %arg1[%c18, %c0_16, %c0_17] : memref<87x8x128xf32, #tpu.memory_space<vmem>>, vector<1x8x128xf32>
    %38 = vector.shape_cast %37 : vector<1x8x128xf32> to vector<8x128xf32>
    %39 = arith.mulf %13, %38 : vector<8x128xf32>
    %40 = arith.addf %36, %39 : vector<8x128xf32>
    %c24 = arith.constant 24 : index
    %c0_18 = arith.constant 0 : index
    %c0_19 = arith.constant 0 : index
    %41 = vector.load %arg1[%c24, %c0_18, %c0_19] : memref<87x8x128xf32, #tpu.memory_space<vmem>>, vector<1x8x128xf32>
    %42 = vector.shape_cast %41 : vector<1x8x128xf32> to vector<8x128xf32>
    %43 = arith.mulf %16, %42 : vector<8x128xf32>
    %44 = arith.addf %40, %43 : vector<8x128xf32>
    %c30 = arith.constant 30 : index
    %c0_20 = arith.constant 0 : index
    %c0_21 = arith.constant 0 : index
    %45 = vector.load %arg1[%c30, %c0_20, %c0_21] : memref<87x8x128xf32, #tpu.memory_space<vmem>>, vector<1x8x128xf32>
    %46 = vector.shape_cast %45 : vector<1x8x128xf32> to vector<8x128xf32>
    %47 = arith.mulf %19, %46 : vector<8x128xf32>
    %48 = arith.addf %44, %47 : vector<8x128xf32>
    %c36 = arith.constant 36 : index
    %c0_22 = arith.constant 0 : index
    %c0_23 = arith.constant 0 : index
    %49 = vector.load %arg1[%c36, %c0_22, %c0_23] : memref<87x8x128xf32, #tpu.memory_space<vmem>>, vector<1x8x128xf32>
    %50 = vector.shape_cast %49 : vector<1x8x128xf32> to vector<8x128xf32>
    %51 = arith.mulf %22, %50 : vector<8x128xf32>
    %52 = arith.addf %48, %51 : vector<8x128xf32>
    %c42 = arith.constant 42 : index
    %c0_24 = arith.constant 0 : index
    %c0_25 = arith.constant 0 : index
    %53 = vector.load %arg1[%c42, %c0_24, %c0_25] : memref<87x8x128xf32, #tpu.memory_space<vmem>>, vector<1x8x128xf32>
    %54 = vector.shape_cast %53 : vector<1x8x128xf32> to vector<8x128xf32>
    %55 = arith.mulf %25, %54 : vector<8x128xf32>
    %56 = arith.addf %52, %55 : vector<8x128xf32>
    %c48 = arith.constant 48 : index
    %c0_26 = arith.constant 0 : index
    %c0_27 = arith.constant 0 : index
    %57 = vector.load %arg1[%c48, %c0_26, %c0_27] : memref<87x8x128xf32, #tpu.memory_space<vmem>>, vector<1x8x128xf32>
    %58 = vector.shape_cast %57 : vector<1x8x128xf32> to vector<8x128xf32>
    %59 = arith.addf %56, %58 : vector<8x128xf32>
    %60 = arith.negf %59 : vector<8x128xf32>
    %61 = math.exp %60 : vector<8x128xf32>
    %cst = arith.constant 1.000000e+00 : f32
    %62 = vector.broadcast %cst : f32 to vector<8x128xf32>
    %63 = arith.addf %62, %61 : vector<8x128xf32>
    %64 = arith.divf %62, %63 : vector<8x128xf32>
    %c1_28 = arith.constant 1 : index
    %c0_29 = arith.constant 0 : index
    %c0_30 = arith.constant 0 : index
    %65 = vector.load %arg1[%c1_28, %c0_29, %c0_30] : memref<87x8x128xf32, #tpu.memory_space<vmem>>, vector<1x8x128xf32>
    %66 = vector.shape_cast %65 : vector<1x8x128xf32> to vector<8x128xf32>
    %67 = arith.mulf %4, %66 : vector<8x128xf32>
    %c7_31 = arith.constant 7 : index
    %c0_32 = arith.constant 0 : index
    %c0_33 = arith.constant 0 : index
    %68 = vector.load %arg1[%c7_31, %c0_32, %c0_33] : memref<87x8x128xf32, #tpu.memory_space<vmem>>, vector<1x8x128xf32>
    %69 = vector.shape_cast %68 : vector<1x8x128xf32> to vector<8x128xf32>
    %70 = arith.mulf %7, %69 : vector<8x128xf32>
    %71 = arith.addf %67, %70 : vector<8x128xf32>
    %c13 = arith.constant 13 : index
    %c0_34 = arith.constant 0 : index
    %c0_35 = arith.constant 0 : index
    %72 = vector.load %arg1[%c13, %c0_34, %c0_35] : memref<87x8x128xf32, #tpu.memory_space<vmem>>, vector<1x8x128xf32>
    %73 = vector.shape_cast %72 : vector<1x8x128xf32> to vector<8x128xf32>
    %74 = arith.mulf %10, %73 : vector<8x128xf32>
    %75 = arith.addf %71, %74 : vector<8x128xf32>
    %c19 = arith.constant 19 : index
    %c0_36 = arith.constant 0 : index
    %c0_37 = arith.constant 0 : index
    %76 = vector.load %arg1[%c19, %c0_36, %c0_37] : memref<87x8x128xf32, #tpu.memory_space<vmem>>, vector<1x8x128xf32>
    %77 = vector.shape_cast %76 : vector<1x8x128xf32> to vector<8x128xf32>
    %78 = arith.mulf %13, %77 : vector<8x128xf32>
    %79 = arith.addf %75, %78 : vector<8x128xf32>
    %c25 = arith.constant 25 : index
    %c0_38 = arith.constant 0 : index
    %c0_39 = arith.constant 0 : index
    %80 = vector.load %arg1[%c25, %c0_38, %c0_39] : memref<87x8x128xf32, #tpu.memory_space<vmem>>, vector<1x8x128xf32>
    %81 = vector.shape_cast %80 : vector<1x8x128xf32> to vector<8x128xf32>
    %82 = arith.mulf %16, %81 : vector<8x128xf32>
    %83 = arith.addf %79, %82 : vector<8x128xf32>
    %c31 = arith.constant 31 : index
    %c0_40 = arith.constant 0 : index
    %c0_41 = arith.constant 0 : index
    %84 = vector.load %arg1[%c31, %c0_40, %c0_41] : memref<87x8x128xf32, #tpu.memory_space<vmem>>, vector<1x8x128xf32>
    %85 = vector.shape_cast %84 : vector<1x8x128xf32> to vector<8x128xf32>
    %86 = arith.mulf %19, %85 : vector<8x128xf32>
    %87 = arith.addf %83, %86 : vector<8x128xf32>
    %c37 = arith.constant 37 : index
    %c0_42 = arith.constant 0 : index
    %c0_43 = arith.constant 0 : index
    %88 = vector.load %arg1[%c37, %c0_42, %c0_43] : memref<87x8x128xf32, #tpu.memory_space<vmem>>, vector<1x8x128xf32>
    %89 = vector.shape_cast %88 : vector<1x8x128xf32> to vector<8x128xf32>
    %90 = arith.mulf %22, %89 : vector<8x128xf32>
    %91 = arith.addf %87, %90 : vector<8x128xf32>
    %c43 = arith.constant 43 : index
    %c0_44 = arith.constant 0 : index
    %c0_45 = arith.constant 0 : index
    %92 = vector.load %arg1[%c43, %c0_44, %c0_45] : memref<87x8x128xf32, #tpu.memory_space<vmem>>, vector<1x8x128xf32>
    %93 = vector.shape_cast %92 : vector<1x8x128xf32> to vector<8x128xf32>
    %94 = arith.mulf %25, %93 : vector<8x128xf32>
    %95 = arith.addf %91, %94 : vector<8x128xf32>
    %c49 = arith.constant 49 : index
    %c0_46 = arith.constant 0 : index
    %c0_47 = arith.constant 0 : index
    %96 = vector.load %arg1[%c49, %c0_46, %c0_47] : memref<87x8x128xf32, #tpu.memory_space<vmem>>, vector<1x8x128xf32>
    %97 = vector.shape_cast %96 : vector<1x8x128xf32> to vector<8x128xf32>
    %98 = arith.addf %95, %97 : vector<8x128xf32>
    %99 = arith.negf %98 : vector<8x128xf32>
    %100 = math.exp %99 : vector<8x128xf32>
    %cst_48 = arith.constant 1.000000e+00 : f32
    %101 = vector.broadcast %cst_48 : f32 to vector<8x128xf32>
    %102 = arith.addf %101, %100 : vector<8x128xf32>
    %103 = arith.divf %101, %102 : vector<8x128xf32>
    %c2_49 = arith.constant 2 : index
    %c0_50 = arith.constant 0 : index
    %c0_51 = arith.constant 0 : index
    %104 = vector.load %arg1[%c2_49, %c0_50, %c0_51] : memref<87x8x128xf32, #tpu.memory_space<vmem>>, vector<1x8x128xf32>
    %105 = vector.shape_cast %104 : vector<1x8x128xf32> to vector<8x128xf32>
    %106 = arith.mulf %4, %105 : vector<8x128xf32>
    %c8 = arith.constant 8 : index
    %c0_52 = arith.constant 0 : index
    %c0_53 = arith.constant 0 : index
    %107 = vector.load %arg1[%c8, %c0_52, %c0_53] : memref<87x8x128xf32, #tpu.memory_space<vmem>>, vector<1x8x128xf32>
    %108 = vector.shape_cast %107 : vector<1x8x128xf32> to vector<8x128xf32>
    %109 = arith.mulf %7, %108 : vector<8x128xf32>
    %110 = arith.addf %106, %109 : vector<8x128xf32>
    %c14 = arith.constant 14 : index
    %c0_54 = arith.constant 0 : index
    %c0_55 = arith.constant 0 : index
    %111 = vector.load %arg1[%c14, %c0_54, %c0_55] : memref<87x8x128xf32, #tpu.memory_space<vmem>>, vector<1x8x128xf32>
    %112 = vector.shape_cast %111 : vector<1x8x128xf32> to vector<8x128xf32>
    %113 = arith.mulf %10, %112 : vector<8x128xf32>
    %114 = arith.addf %110, %113 : vector<8x128xf32>
    %c20 = arith.constant 20 : index
    %c0_56 = arith.constant 0 : index
    %c0_57 = arith.constant 0 : index
    %115 = vector.load %arg1[%c20, %c0_56, %c0_57] : memref<87x8x128xf32, #tpu.memory_space<vmem>>, vector<1x8x128xf32>
    %116 = vector.shape_cast %115 : vector<1x8x128xf32> to vector<8x128xf32>
    %117 = arith.mulf %13, %116 : vector<8x128xf32>
    %118 = arith.addf %114, %117 : vector<8x128xf32>
    %c26 = arith.constant 26 : index
    %c0_58 = arith.constant 0 : index
    %c0_59 = arith.constant 0 : index
    %119 = vector.load %arg1[%c26, %c0_58, %c0_59] : memref<87x8x128xf32, #tpu.memory_space<vmem>>, vector<1x8x128xf32>
    %120 = vector.shape_cast %119 : vector<1x8x128xf32> to vector<8x128xf32>
    %121 = arith.mulf %16, %120 : vector<8x128xf32>
    %122 = arith.addf %118, %121 : vector<8x128xf32>
    %c32 = arith.constant 32 : index
    %c0_60 = arith.constant 0 : index
    %c0_61 = arith.constant 0 : index
    %123 = vector.load %arg1[%c32, %c0_60, %c0_61] : memref<87x8x128xf32, #tpu.memory_space<vmem>>, vector<1x8x128xf32>
    %124 = vector.shape_cast %123 : vector<1x8x128xf32> to vector<8x128xf32>
    %125 = arith.mulf %19, %124 : vector<8x128xf32>
    %126 = arith.addf %122, %125 : vector<8x128xf32>
    %c38 = arith.constant 38 : index
    %c0_62 = arith.constant 0 : index
    %c0_63 = arith.constant 0 : index
    %127 = vector.load %arg1[%c38, %c0_62, %c0_63] : memref<87x8x128xf32, #tpu.memory_space<vmem>>, vector<1x8x128xf32>
    %128 = vector.shape_cast %127 : vector<1x8x128xf32> to vector<8x128xf32>
    %129 = arith.mulf %22, %128 : vector<8x128xf32>
    %130 = arith.addf %126, %129 : vector<8x128xf32>
    %c44 = arith.constant 44 : index
    %c0_64 = arith.constant 0 : index
    %c0_65 = arith.constant 0 : index
    %131 = vector.load %arg1[%c44, %c0_64, %c0_65] : memref<87x8x128xf32, #tpu.memory_space<vmem>>, vector<1x8x128xf32>
    %132 = vector.shape_cast %131 : vector<1x8x128xf32> to vector<8x128xf32>
    %133 = arith.mulf %25, %132 : vector<8x128xf32>
    %134 = arith.addf %130, %133 : vector<8x128xf32>
    %c50 = arith.constant 50 : index
    %c0_66 = arith.constant 0 : index
    %c0_67 = arith.constant 0 : index
    %135 = vector.load %arg1[%c50, %c0_66, %c0_67] : memref<87x8x128xf32, #tpu.memory_space<vmem>>, vector<1x8x128xf32>
    %136 = vector.shape_cast %135 : vector<1x8x128xf32> to vector<8x128xf32>
    %137 = arith.addf %134, %136 : vector<8x128xf32>
    %138 = arith.negf %137 : vector<8x128xf32>
    %139 = math.exp %138 : vector<8x128xf32>
    %cst_68 = arith.constant 1.000000e+00 : f32
    %140 = vector.broadcast %cst_68 : f32 to vector<8x128xf32>
    %141 = arith.addf %140, %139 : vector<8x128xf32>
    %142 = arith.divf %140, %141 : vector<8x128xf32>
    %c3_69 = arith.constant 3 : index
    %c0_70 = arith.constant 0 : index
    %c0_71 = arith.constant 0 : index
    %143 = vector.load %arg1[%c3_69, %c0_70, %c0_71] : memref<87x8x128xf32, #tpu.memory_space<vmem>>, vector<1x8x128xf32>
    %144 = vector.shape_cast %143 : vector<1x8x128xf32> to vector<8x128xf32>
    %145 = arith.mulf %4, %144 : vector<8x128xf32>
    %c9 = arith.constant 9 : index
    %c0_72 = arith.constant 0 : index
    %c0_73 = arith.constant 0 : index
    %146 = vector.load %arg1[%c9, %c0_72, %c0_73] : memref<87x8x128xf32, #tpu.memory_space<vmem>>, vector<1x8x128xf32>
    %147 = vector.shape_cast %146 : vector<1x8x128xf32> to vector<8x128xf32>
    %148 = arith.mulf %7, %147 : vector<8x128xf32>
    %149 = arith.addf %145, %148 : vector<8x128xf32>
    %c15 = arith.constant 15 : index
    %c0_74 = arith.constant 0 : index
    %c0_75 = arith.constant 0 : index
    %150 = vector.load %arg1[%c15, %c0_74, %c0_75] : memref<87x8x128xf32, #tpu.memory_space<vmem>>, vector<1x8x128xf32>
    %151 = vector.shape_cast %150 : vector<1x8x128xf32> to vector<8x128xf32>
    %152 = arith.mulf %10, %151 : vector<8x128xf32>
    %153 = arith.addf %149, %152 : vector<8x128xf32>
    %c21 = arith.constant 21 : index
    %c0_76 = arith.constant 0 : index
    %c0_77 = arith.constant 0 : index
    %154 = vector.load %arg1[%c21, %c0_76, %c0_77] : memref<87x8x128xf32, #tpu.memory_space<vmem>>, vector<1x8x128xf32>
    %155 = vector.shape_cast %154 : vector<1x8x128xf32> to vector<8x128xf32>
    %156 = arith.mulf %13, %155 : vector<8x128xf32>
    %157 = arith.addf %153, %156 : vector<8x128xf32>
    %c27 = arith.constant 27 : index
    %c0_78 = arith.constant 0 : index
    %c0_79 = arith.constant 0 : index
    %158 = vector.load %arg1[%c27, %c0_78, %c0_79] : memref<87x8x128xf32, #tpu.memory_space<vmem>>, vector<1x8x128xf32>
    %159 = vector.shape_cast %158 : vector<1x8x128xf32> to vector<8x128xf32>
    %160 = arith.mulf %16, %159 : vector<8x128xf32>
    %161 = arith.addf %157, %160 : vector<8x128xf32>
    %c33 = arith.constant 33 : index
    %c0_80 = arith.constant 0 : index
    %c0_81 = arith.constant 0 : index
    %162 = vector.load %arg1[%c33, %c0_80, %c0_81] : memref<87x8x128xf32, #tpu.memory_space<vmem>>, vector<1x8x128xf32>
    %163 = vector.shape_cast %162 : vector<1x8x128xf32> to vector<8x128xf32>
    %164 = arith.mulf %19, %163 : vector<8x128xf32>
    %165 = arith.addf %161, %164 : vector<8x128xf32>
    %c39 = arith.constant 39 : index
    %c0_82 = arith.constant 0 : index
    %c0_83 = arith.constant 0 : index
    %166 = vector.load %arg1[%c39, %c0_82, %c0_83] : memref<87x8x128xf32, #tpu.memory_space<vmem>>, vector<1x8x128xf32>
    %167 = vector.shape_cast %166 : vector<1x8x128xf32> to vector<8x128xf32>
    %168 = arith.mulf %22, %167 : vector<8x128xf32>
    %169 = arith.addf %165, %168 : vector<8x128xf32>
    %c45 = arith.constant 45 : index
    %c0_84 = arith.constant 0 : index
    %c0_85 = arith.constant 0 : index
    %170 = vector.load %arg1[%c45, %c0_84, %c0_85] : memref<87x8x128xf32, #tpu.memory_space<vmem>>, vector<1x8x128xf32>
    %171 = vector.shape_cast %170 : vector<1x8x128xf32> to vector<8x128xf32>
    %172 = arith.mulf %25, %171 : vector<8x128xf32>
    %173 = arith.addf %169, %172 : vector<8x128xf32>
    %c51 = arith.constant 51 : index
    %c0_86 = arith.constant 0 : index
    %c0_87 = arith.constant 0 : index
    %174 = vector.load %arg1[%c51, %c0_86, %c0_87] : memref<87x8x128xf32, #tpu.memory_space<vmem>>, vector<1x8x128xf32>
    %175 = vector.shape_cast %174 : vector<1x8x128xf32> to vector<8x128xf32>
    %176 = arith.addf %173, %175 : vector<8x128xf32>
    %177 = arith.negf %176 : vector<8x128xf32>
    %178 = math.exp %177 : vector<8x128xf32>
    %cst_88 = arith.constant 1.000000e+00 : f32
    %179 = vector.broadcast %cst_88 : f32 to vector<8x128xf32>
    %180 = arith.addf %179, %178 : vector<8x128xf32>
    %181 = arith.divf %179, %180 : vector<8x128xf32>
    %c4_89 = arith.constant 4 : index
    %c0_90 = arith.constant 0 : index
    %c0_91 = arith.constant 0 : index
    %182 = vector.load %arg1[%c4_89, %c0_90, %c0_91] : memref<87x8x128xf32, #tpu.memory_space<vmem>>, vector<1x8x128xf32>
    %183 = vector.shape_cast %182 : vector<1x8x128xf32> to vector<8x128xf32>
    %184 = arith.mulf %4, %183 : vector<8x128xf32>
    %c10 = arith.constant 10 : index
    %c0_92 = arith.constant 0 : index
    %c0_93 = arith.constant 0 : index
    %185 = vector.load %arg1[%c10, %c0_92, %c0_93] : memref<87x8x128xf32, #tpu.memory_space<vmem>>, vector<1x8x128xf32>
    %186 = vector.shape_cast %185 : vector<1x8x128xf32> to vector<8x128xf32>
    %187 = arith.mulf %7, %186 : vector<8x128xf32>
    %188 = arith.addf %184, %187 : vector<8x128xf32>
    %c16 = arith.constant 16 : index
    %c0_94 = arith.constant 0 : index
    %c0_95 = arith.constant 0 : index
    %189 = vector.load %arg1[%c16, %c0_94, %c0_95] : memref<87x8x128xf32, #tpu.memory_space<vmem>>, vector<1x8x128xf32>
    %190 = vector.shape_cast %189 : vector<1x8x128xf32> to vector<8x128xf32>
    %191 = arith.mulf %10, %190 : vector<8x128xf32>
    %192 = arith.addf %188, %191 : vector<8x128xf32>
    %c22 = arith.constant 22 : index
    %c0_96 = arith.constant 0 : index
    %c0_97 = arith.constant 0 : index
    %193 = vector.load %arg1[%c22, %c0_96, %c0_97] : memref<87x8x128xf32, #tpu.memory_space<vmem>>, vector<1x8x128xf32>
    %194 = vector.shape_cast %193 : vector<1x8x128xf32> to vector<8x128xf32>
    %195 = arith.mulf %13, %194 : vector<8x128xf32>
    %196 = arith.addf %192, %195 : vector<8x128xf32>
    %c28 = arith.constant 28 : index
    %c0_98 = arith.constant 0 : index
    %c0_99 = arith.constant 0 : index
    %197 = vector.load %arg1[%c28, %c0_98, %c0_99] : memref<87x8x128xf32, #tpu.memory_space<vmem>>, vector<1x8x128xf32>
    %198 = vector.shape_cast %197 : vector<1x8x128xf32> to vector<8x128xf32>
    %199 = arith.mulf %16, %198 : vector<8x128xf32>
    %200 = arith.addf %196, %199 : vector<8x128xf32>
    %c34 = arith.constant 34 : index
    %c0_100 = arith.constant 0 : index
    %c0_101 = arith.constant 0 : index
    %201 = vector.load %arg1[%c34, %c0_100, %c0_101] : memref<87x8x128xf32, #tpu.memory_space<vmem>>, vector<1x8x128xf32>
    %202 = vector.shape_cast %201 : vector<1x8x128xf32> to vector<8x128xf32>
    %203 = arith.mulf %19, %202 : vector<8x128xf32>
    %204 = arith.addf %200, %203 : vector<8x128xf32>
    %c40 = arith.constant 40 : index
    %c0_102 = arith.constant 0 : index
    %c0_103 = arith.constant 0 : index
    %205 = vector.load %arg1[%c40, %c0_102, %c0_103] : memref<87x8x128xf32, #tpu.memory_space<vmem>>, vector<1x8x128xf32>
    %206 = vector.shape_cast %205 : vector<1x8x128xf32> to vector<8x128xf32>
    %207 = arith.mulf %22, %206 : vector<8x128xf32>
    %208 = arith.addf %204, %207 : vector<8x128xf32>
    %c46 = arith.constant 46 : index
    %c0_104 = arith.constant 0 : index
    %c0_105 = arith.constant 0 : index
    %209 = vector.load %arg1[%c46, %c0_104, %c0_105] : memref<87x8x128xf32, #tpu.memory_space<vmem>>, vector<1x8x128xf32>
    %210 = vector.shape_cast %209 : vector<1x8x128xf32> to vector<8x128xf32>
    %211 = arith.mulf %25, %210 : vector<8x128xf32>
    %212 = arith.addf %208, %211 : vector<8x128xf32>
    %c52 = arith.constant 52 : index
    %c0_106 = arith.constant 0 : index
    %c0_107 = arith.constant 0 : index
    %213 = vector.load %arg1[%c52, %c0_106, %c0_107] : memref<87x8x128xf32, #tpu.memory_space<vmem>>, vector<1x8x128xf32>
    %214 = vector.shape_cast %213 : vector<1x8x128xf32> to vector<8x128xf32>
    %215 = arith.addf %212, %214 : vector<8x128xf32>
    %216 = arith.negf %215 : vector<8x128xf32>
    %217 = math.exp %216 : vector<8x128xf32>
    %cst_108 = arith.constant 1.000000e+00 : f32
    %218 = vector.broadcast %cst_108 : f32 to vector<8x128xf32>
    %219 = arith.addf %218, %217 : vector<8x128xf32>
    %220 = arith.divf %218, %219 : vector<8x128xf32>
    %c5_109 = arith.constant 5 : index
    %c0_110 = arith.constant 0 : index
    %c0_111 = arith.constant 0 : index
    %221 = vector.load %arg1[%c5_109, %c0_110, %c0_111] : memref<87x8x128xf32, #tpu.memory_space<vmem>>, vector<1x8x128xf32>
    %222 = vector.shape_cast %221 : vector<1x8x128xf32> to vector<8x128xf32>
    %223 = arith.mulf %4, %222 : vector<8x128xf32>
    %c11 = arith.constant 11 : index
    %c0_112 = arith.constant 0 : index
    %c0_113 = arith.constant 0 : index
    %224 = vector.load %arg1[%c11, %c0_112, %c0_113] : memref<87x8x128xf32, #tpu.memory_space<vmem>>, vector<1x8x128xf32>
    %225 = vector.shape_cast %224 : vector<1x8x128xf32> to vector<8x128xf32>
    %226 = arith.mulf %7, %225 : vector<8x128xf32>
    %227 = arith.addf %223, %226 : vector<8x128xf32>
    %c17 = arith.constant 17 : index
    %c0_114 = arith.constant 0 : index
    %c0_115 = arith.constant 0 : index
    %228 = vector.load %arg1[%c17, %c0_114, %c0_115] : memref<87x8x128xf32, #tpu.memory_space<vmem>>, vector<1x8x128xf32>
    %229 = vector.shape_cast %228 : vector<1x8x128xf32> to vector<8x128xf32>
    %230 = arith.mulf %10, %229 : vector<8x128xf32>
    %231 = arith.addf %227, %230 : vector<8x128xf32>
    %c23 = arith.constant 23 : index
    %c0_116 = arith.constant 0 : index
    %c0_117 = arith.constant 0 : index
    %232 = vector.load %arg1[%c23, %c0_116, %c0_117] : memref<87x8x128xf32, #tpu.memory_space<vmem>>, vector<1x8x128xf32>
    %233 = vector.shape_cast %232 : vector<1x8x128xf32> to vector<8x128xf32>
    %234 = arith.mulf %13, %233 : vector<8x128xf32>
    %235 = arith.addf %231, %234 : vector<8x128xf32>
    %c29 = arith.constant 29 : index
    %c0_118 = arith.constant 0 : index
    %c0_119 = arith.constant 0 : index
    %236 = vector.load %arg1[%c29, %c0_118, %c0_119] : memref<87x8x128xf32, #tpu.memory_space<vmem>>, vector<1x8x128xf32>
    %237 = vector.shape_cast %236 : vector<1x8x128xf32> to vector<8x128xf32>
    %238 = arith.mulf %16, %237 : vector<8x128xf32>
    %239 = arith.addf %235, %238 : vector<8x128xf32>
    %c35 = arith.constant 35 : index
    %c0_120 = arith.constant 0 : index
    %c0_121 = arith.constant 0 : index
    %240 = vector.load %arg1[%c35, %c0_120, %c0_121] : memref<87x8x128xf32, #tpu.memory_space<vmem>>, vector<1x8x128xf32>
    %241 = vector.shape_cast %240 : vector<1x8x128xf32> to vector<8x128xf32>
    %242 = arith.mulf %19, %241 : vector<8x128xf32>
    %243 = arith.addf %239, %242 : vector<8x128xf32>
    %c41 = arith.constant 41 : index
    %c0_122 = arith.constant 0 : index
    %c0_123 = arith.constant 0 : index
    %244 = vector.load %arg1[%c41, %c0_122, %c0_123] : memref<87x8x128xf32, #tpu.memory_space<vmem>>, vector<1x8x128xf32>
    %245 = vector.shape_cast %244 : vector<1x8x128xf32> to vector<8x128xf32>
    %246 = arith.mulf %22, %245 : vector<8x128xf32>
    %247 = arith.addf %243, %246 : vector<8x128xf32>
    %c47 = arith.constant 47 : index
    %c0_124 = arith.constant 0 : index
    %c0_125 = arith.constant 0 : index
    %248 = vector.load %arg1[%c47, %c0_124, %c0_125] : memref<87x8x128xf32, #tpu.memory_space<vmem>>, vector<1x8x128xf32>
    %249 = vector.shape_cast %248 : vector<1x8x128xf32> to vector<8x128xf32>
    %250 = arith.mulf %25, %249 : vector<8x128xf32>
    %251 = arith.addf %247, %250 : vector<8x128xf32>
    %c53 = arith.constant 53 : index
    %c0_126 = arith.constant 0 : index
    %c0_127 = arith.constant 0 : index
    %252 = vector.load %arg1[%c53, %c0_126, %c0_127] : memref<87x8x128xf32, #tpu.memory_space<vmem>>, vector<1x8x128xf32>
    %253 = vector.shape_cast %252 : vector<1x8x128xf32> to vector<8x128xf32>
    %254 = arith.addf %251, %253 : vector<8x128xf32>
    %255 = arith.negf %254 : vector<8x128xf32>
    %256 = math.exp %255 : vector<8x128xf32>
    %cst_128 = arith.constant 1.000000e+00 : f32
    %257 = vector.broadcast %cst_128 : f32 to vector<8x128xf32>
    %258 = arith.addf %257, %256 : vector<8x128xf32>
    %259 = arith.divf %257, %258 : vector<8x128xf32>
    %c54 = arith.constant 54 : index
    %c0_129 = arith.constant 0 : index
    %c0_130 = arith.constant 0 : index
    %260 = vector.load %arg1[%c54, %c0_129, %c0_130] : memref<87x8x128xf32, #tpu.memory_space<vmem>>, vector<1x8x128xf32>
    %261 = vector.shape_cast %260 : vector<1x8x128xf32> to vector<8x128xf32>
    %262 = arith.mulf %64, %261 : vector<8x128xf32>
    %c58 = arith.constant 58 : index
    %c0_131 = arith.constant 0 : index
    %c0_132 = arith.constant 0 : index
    %263 = vector.load %arg1[%c58, %c0_131, %c0_132] : memref<87x8x128xf32, #tpu.memory_space<vmem>>, vector<1x8x128xf32>
    %264 = vector.shape_cast %263 : vector<1x8x128xf32> to vector<8x128xf32>
    %265 = arith.mulf %103, %264 : vector<8x128xf32>
    %266 = arith.addf %262, %265 : vector<8x128xf32>
    %c62 = arith.constant 62 : index
    %c0_133 = arith.constant 0 : index
    %c0_134 = arith.constant 0 : index
    %267 = vector.load %arg1[%c62, %c0_133, %c0_134] : memref<87x8x128xf32, #tpu.memory_space<vmem>>, vector<1x8x128xf32>
    %268 = vector.shape_cast %267 : vector<1x8x128xf32> to vector<8x128xf32>
    %269 = arith.mulf %142, %268 : vector<8x128xf32>
    %270 = arith.addf %266, %269 : vector<8x128xf32>
    %c66 = arith.constant 66 : index
    %c0_135 = arith.constant 0 : index
    %c0_136 = arith.constant 0 : index
    %271 = vector.load %arg1[%c66, %c0_135, %c0_136] : memref<87x8x128xf32, #tpu.memory_space<vmem>>, vector<1x8x128xf32>
    %272 = vector.shape_cast %271 : vector<1x8x128xf32> to vector<8x128xf32>
    %273 = arith.mulf %181, %272 : vector<8x128xf32>
    %274 = arith.addf %270, %273 : vector<8x128xf32>
    %c70 = arith.constant 70 : index
    %c0_137 = arith.constant 0 : index
    %c0_138 = arith.constant 0 : index
    %275 = vector.load %arg1[%c70, %c0_137, %c0_138] : memref<87x8x128xf32, #tpu.memory_space<vmem>>, vector<1x8x128xf32>
    %276 = vector.shape_cast %275 : vector<1x8x128xf32> to vector<8x128xf32>
    %277 = arith.mulf %220, %276 : vector<8x128xf32>
    %278 = arith.addf %274, %277 : vector<8x128xf32>
    %c74 = arith.constant 74 : index
    %c0_139 = arith.constant 0 : index
    %c0_140 = arith.constant 0 : index
    %279 = vector.load %arg1[%c74, %c0_139, %c0_140] : memref<87x8x128xf32, #tpu.memory_space<vmem>>, vector<1x8x128xf32>
    %280 = vector.shape_cast %279 : vector<1x8x128xf32> to vector<8x128xf32>
    %281 = arith.mulf %259, %280 : vector<8x128xf32>
    %282 = arith.addf %278, %281 : vector<8x128xf32>
    %c78 = arith.constant 78 : index
    %c0_141 = arith.constant 0 : index
    %c0_142 = arith.constant 0 : index
    %283 = vector.load %arg1[%c78, %c0_141, %c0_142] : memref<87x8x128xf32, #tpu.memory_space<vmem>>, vector<1x8x128xf32>
    %284 = vector.shape_cast %283 : vector<1x8x128xf32> to vector<8x128xf32>
    %285 = arith.addf %282, %284 : vector<8x128xf32>
    %286 = arith.negf %285 : vector<8x128xf32>
    %287 = math.exp %286 : vector<8x128xf32>
    %cst_143 = arith.constant 1.000000e+00 : f32
    %288 = vector.broadcast %cst_143 : f32 to vector<8x128xf32>
    %289 = arith.addf %288, %287 : vector<8x128xf32>
    %290 = arith.divf %288, %289 : vector<8x128xf32>
    %c55 = arith.constant 55 : index
    %c0_144 = arith.constant 0 : index
    %c0_145 = arith.constant 0 : index
    %291 = vector.load %arg1[%c55, %c0_144, %c0_145] : memref<87x8x128xf32, #tpu.memory_space<vmem>>, vector<1x8x128xf32>
    %292 = vector.shape_cast %291 : vector<1x8x128xf32> to vector<8x128xf32>
    %293 = arith.mulf %64, %292 : vector<8x128xf32>
    %c59 = arith.constant 59 : index
    %c0_146 = arith.constant 0 : index
    %c0_147 = arith.constant 0 : index
    %294 = vector.load %arg1[%c59, %c0_146, %c0_147] : memref<87x8x128xf32, #tpu.memory_space<vmem>>, vector<1x8x128xf32>
    %295 = vector.shape_cast %294 : vector<1x8x128xf32> to vector<8x128xf32>
    %296 = arith.mulf %103, %295 : vector<8x128xf32>
    %297 = arith.addf %293, %296 : vector<8x128xf32>
    %c63 = arith.constant 63 : index
    %c0_148 = arith.constant 0 : index
    %c0_149 = arith.constant 0 : index
    %298 = vector.load %arg1[%c63, %c0_148, %c0_149] : memref<87x8x128xf32, #tpu.memory_space<vmem>>, vector<1x8x128xf32>
    %299 = vector.shape_cast %298 : vector<1x8x128xf32> to vector<8x128xf32>
    %300 = arith.mulf %142, %299 : vector<8x128xf32>
    %301 = arith.addf %297, %300 : vector<8x128xf32>
    %c67 = arith.constant 67 : index
    %c0_150 = arith.constant 0 : index
    %c0_151 = arith.constant 0 : index
    %302 = vector.load %arg1[%c67, %c0_150, %c0_151] : memref<87x8x128xf32, #tpu.memory_space<vmem>>, vector<1x8x128xf32>
    %303 = vector.shape_cast %302 : vector<1x8x128xf32> to vector<8x128xf32>
    %304 = arith.mulf %181, %303 : vector<8x128xf32>
    %305 = arith.addf %301, %304 : vector<8x128xf32>
    %c71 = arith.constant 71 : index
    %c0_152 = arith.constant 0 : index
    %c0_153 = arith.constant 0 : index
    %306 = vector.load %arg1[%c71, %c0_152, %c0_153] : memref<87x8x128xf32, #tpu.memory_space<vmem>>, vector<1x8x128xf32>
    %307 = vector.shape_cast %306 : vector<1x8x128xf32> to vector<8x128xf32>
    %308 = arith.mulf %220, %307 : vector<8x128xf32>
    %309 = arith.addf %305, %308 : vector<8x128xf32>
    %c75 = arith.constant 75 : index
    %c0_154 = arith.constant 0 : index
    %c0_155 = arith.constant 0 : index
    %310 = vector.load %arg1[%c75, %c0_154, %c0_155] : memref<87x8x128xf32, #tpu.memory_space<vmem>>, vector<1x8x128xf32>
    %311 = vector.shape_cast %310 : vector<1x8x128xf32> to vector<8x128xf32>
    %312 = arith.mulf %259, %311 : vector<8x128xf32>
    %313 = arith.addf %309, %312 : vector<8x128xf32>
    %c79 = arith.constant 79 : index
    %c0_156 = arith.constant 0 : index
    %c0_157 = arith.constant 0 : index
    %314 = vector.load %arg1[%c79, %c0_156, %c0_157] : memref<87x8x128xf32, #tpu.memory_space<vmem>>, vector<1x8x128xf32>
    %315 = vector.shape_cast %314 : vector<1x8x128xf32> to vector<8x128xf32>
    %316 = arith.addf %313, %315 : vector<8x128xf32>
    %317 = arith.negf %316 : vector<8x128xf32>
    %318 = math.exp %317 : vector<8x128xf32>
    %cst_158 = arith.constant 1.000000e+00 : f32
    %319 = vector.broadcast %cst_158 : f32 to vector<8x128xf32>
    %320 = arith.addf %319, %318 : vector<8x128xf32>
    %321 = arith.divf %319, %320 : vector<8x128xf32>
    %c56 = arith.constant 56 : index
    %c0_159 = arith.constant 0 : index
    %c0_160 = arith.constant 0 : index
    %322 = vector.load %arg1[%c56, %c0_159, %c0_160] : memref<87x8x128xf32, #tpu.memory_space<vmem>>, vector<1x8x128xf32>
    %323 = vector.shape_cast %322 : vector<1x8x128xf32> to vector<8x128xf32>
    %324 = arith.mulf %64, %323 : vector<8x128xf32>
    %c60 = arith.constant 60 : index
    %c0_161 = arith.constant 0 : index
    %c0_162 = arith.constant 0 : index
    %325 = vector.load %arg1[%c60, %c0_161, %c0_162] : memref<87x8x128xf32, #tpu.memory_space<vmem>>, vector<1x8x128xf32>
    %326 = vector.shape_cast %325 : vector<1x8x128xf32> to vector<8x128xf32>
    %327 = arith.mulf %103, %326 : vector<8x128xf32>
    %328 = arith.addf %324, %327 : vector<8x128xf32>
    %c64 = arith.constant 64 : index
    %c0_163 = arith.constant 0 : index
    %c0_164 = arith.constant 0 : index
    %329 = vector.load %arg1[%c64, %c0_163, %c0_164] : memref<87x8x128xf32, #tpu.memory_space<vmem>>, vector<1x8x128xf32>
    %330 = vector.shape_cast %329 : vector<1x8x128xf32> to vector<8x128xf32>
    %331 = arith.mulf %142, %330 : vector<8x128xf32>
    %332 = arith.addf %328, %331 : vector<8x128xf32>
    %c68 = arith.constant 68 : index
    %c0_165 = arith.constant 0 : index
    %c0_166 = arith.constant 0 : index
    %333 = vector.load %arg1[%c68, %c0_165, %c0_166] : memref<87x8x128xf32, #tpu.memory_space<vmem>>, vector<1x8x128xf32>
    %334 = vector.shape_cast %333 : vector<1x8x128xf32> to vector<8x128xf32>
    %335 = arith.mulf %181, %334 : vector<8x128xf32>
    %336 = arith.addf %332, %335 : vector<8x128xf32>
    %c72 = arith.constant 72 : index
    %c0_167 = arith.constant 0 : index
    %c0_168 = arith.constant 0 : index
    %337 = vector.load %arg1[%c72, %c0_167, %c0_168] : memref<87x8x128xf32, #tpu.memory_space<vmem>>, vector<1x8x128xf32>
    %338 = vector.shape_cast %337 : vector<1x8x128xf32> to vector<8x128xf32>
    %339 = arith.mulf %220, %338 : vector<8x128xf32>
    %340 = arith.addf %336, %339 : vector<8x128xf32>
    %c76 = arith.constant 76 : index
    %c0_169 = arith.constant 0 : index
    %c0_170 = arith.constant 0 : index
    %341 = vector.load %arg1[%c76, %c0_169, %c0_170] : memref<87x8x128xf32, #tpu.memory_space<vmem>>, vector<1x8x128xf32>
    %342 = vector.shape_cast %341 : vector<1x8x128xf32> to vector<8x128xf32>
    %343 = arith.mulf %259, %342 : vector<8x128xf32>
    %344 = arith.addf %340, %343 : vector<8x128xf32>
    %c80 = arith.constant 80 : index
    %c0_171 = arith.constant 0 : index
    %c0_172 = arith.constant 0 : index
    %345 = vector.load %arg1[%c80, %c0_171, %c0_172] : memref<87x8x128xf32, #tpu.memory_space<vmem>>, vector<1x8x128xf32>
    %346 = vector.shape_cast %345 : vector<1x8x128xf32> to vector<8x128xf32>
    %347 = arith.addf %344, %346 : vector<8x128xf32>
    %348 = arith.negf %347 : vector<8x128xf32>
    %349 = math.exp %348 : vector<8x128xf32>
    %cst_173 = arith.constant 1.000000e+00 : f32
    %350 = vector.broadcast %cst_173 : f32 to vector<8x128xf32>
    %351 = arith.addf %350, %349 : vector<8x128xf32>
    %352 = arith.divf %350, %351 : vector<8x128xf32>
    %c57 = arith.constant 57 : index
    %c0_174 = arith.constant 0 : index
    %c0_175 = arith.constant 0 : index
    %353 = vector.load %arg1[%c57, %c0_174, %c0_175] : memref<87x8x128xf32, #tpu.memory_space<vmem>>, vector<1x8x128xf32>
    %354 = vector.shape_cast %353 : vector<1x8x128xf32> to vector<8x128xf32>
    %355 = arith.mulf %64, %354 : vector<8x128xf32>
    %c61 = arith.constant 61 : index
    %c0_176 = arith.constant 0 : index
    %c0_177 = arith.constant 0 : index
    %356 = vector.load %arg1[%c61, %c0_176, %c0_177] : memref<87x8x128xf32, #tpu.memory_space<vmem>>, vector<1x8x128xf32>
    %357 = vector.shape_cast %356 : vector<1x8x128xf32> to vector<8x128xf32>
    %358 = arith.mulf %103, %357 : vector<8x128xf32>
    %359 = arith.addf %355, %358 : vector<8x128xf32>
    %c65 = arith.constant 65 : index
    %c0_178 = arith.constant 0 : index
    %c0_179 = arith.constant 0 : index
    %360 = vector.load %arg1[%c65, %c0_178, %c0_179] : memref<87x8x128xf32, #tpu.memory_space<vmem>>, vector<1x8x128xf32>
    %361 = vector.shape_cast %360 : vector<1x8x128xf32> to vector<8x128xf32>
    %362 = arith.mulf %142, %361 : vector<8x128xf32>
    %363 = arith.addf %359, %362 : vector<8x128xf32>
    %c69 = arith.constant 69 : index
    %c0_180 = arith.constant 0 : index
    %c0_181 = arith.constant 0 : index
    %364 = vector.load %arg1[%c69, %c0_180, %c0_181] : memref<87x8x128xf32, #tpu.memory_space<vmem>>, vector<1x8x128xf32>
    %365 = vector.shape_cast %364 : vector<1x8x128xf32> to vector<8x128xf32>
    %366 = arith.mulf %181, %365 : vector<8x128xf32>
    %367 = arith.addf %363, %366 : vector<8x128xf32>
    %c73 = arith.constant 73 : index
    %c0_182 = arith.constant 0 : index
    %c0_183 = arith.constant 0 : index
    %368 = vector.load %arg1[%c73, %c0_182, %c0_183] : memref<87x8x128xf32, #tpu.memory_space<vmem>>, vector<1x8x128xf32>
    %369 = vector.shape_cast %368 : vector<1x8x128xf32> to vector<8x128xf32>
    %370 = arith.mulf %220, %369 : vector<8x128xf32>
    %371 = arith.addf %367, %370 : vector<8x128xf32>
    %c77 = arith.constant 77 : index
    %c0_184 = arith.constant 0 : index
    %c0_185 = arith.constant 0 : index
    %372 = vector.load %arg1[%c77, %c0_184, %c0_185] : memref<87x8x128xf32, #tpu.memory_space<vmem>>, vector<1x8x128xf32>
    %373 = vector.shape_cast %372 : vector<1x8x128xf32> to vector<8x128xf32>
    %374 = arith.mulf %259, %373 : vector<8x128xf32>
    %375 = arith.addf %371, %374 : vector<8x128xf32>
    %c81 = arith.constant 81 : index
    %c0_186 = arith.constant 0 : index
    %c0_187 = arith.constant 0 : index
    %376 = vector.load %arg1[%c81, %c0_186, %c0_187] : memref<87x8x128xf32, #tpu.memory_space<vmem>>, vector<1x8x128xf32>
    %377 = vector.shape_cast %376 : vector<1x8x128xf32> to vector<8x128xf32>
    %378 = arith.addf %375, %377 : vector<8x128xf32>
    %379 = arith.negf %378 : vector<8x128xf32>
    %380 = math.exp %379 : vector<8x128xf32>
    %cst_188 = arith.constant 1.000000e+00 : f32
    %381 = vector.broadcast %cst_188 : f32 to vector<8x128xf32>
    %382 = arith.addf %381, %380 : vector<8x128xf32>
    %383 = arith.divf %381, %382 : vector<8x128xf32>
    %c82 = arith.constant 82 : index
    %c0_189 = arith.constant 0 : index
    %c0_190 = arith.constant 0 : index
    %384 = vector.load %arg1[%c82, %c0_189, %c0_190] : memref<87x8x128xf32, #tpu.memory_space<vmem>>, vector<1x8x128xf32>
    %385 = vector.shape_cast %384 : vector<1x8x128xf32> to vector<8x128xf32>
    %386 = arith.mulf %290, %385 : vector<8x128xf32>
    %c83 = arith.constant 83 : index
    %c0_191 = arith.constant 0 : index
    %c0_192 = arith.constant 0 : index
    %387 = vector.load %arg1[%c83, %c0_191, %c0_192] : memref<87x8x128xf32, #tpu.memory_space<vmem>>, vector<1x8x128xf32>
    %388 = vector.shape_cast %387 : vector<1x8x128xf32> to vector<8x128xf32>
    %389 = arith.mulf %321, %388 : vector<8x128xf32>
    %390 = arith.addf %386, %389 : vector<8x128xf32>
    %c84 = arith.constant 84 : index
    %c0_193 = arith.constant 0 : index
    %c0_194 = arith.constant 0 : index
    %391 = vector.load %arg1[%c84, %c0_193, %c0_194] : memref<87x8x128xf32, #tpu.memory_space<vmem>>, vector<1x8x128xf32>
    %392 = vector.shape_cast %391 : vector<1x8x128xf32> to vector<8x128xf32>
    %393 = arith.mulf %352, %392 : vector<8x128xf32>
    %394 = arith.addf %390, %393 : vector<8x128xf32>
    %c85 = arith.constant 85 : index
    %c0_195 = arith.constant 0 : index
    %c0_196 = arith.constant 0 : index
    %395 = vector.load %arg1[%c85, %c0_195, %c0_196] : memref<87x8x128xf32, #tpu.memory_space<vmem>>, vector<1x8x128xf32>
    %396 = vector.shape_cast %395 : vector<1x8x128xf32> to vector<8x128xf32>
    %397 = arith.mulf %383, %396 : vector<8x128xf32>
    %398 = arith.addf %394, %397 : vector<8x128xf32>
    %c86 = arith.constant 86 : index
    %c0_197 = arith.constant 0 : index
    %c0_198 = arith.constant 0 : index
    %399 = vector.load %arg1[%c86, %c0_197, %c0_198] : memref<87x8x128xf32, #tpu.memory_space<vmem>>, vector<1x8x128xf32>
    %400 = vector.shape_cast %399 : vector<1x8x128xf32> to vector<8x128xf32>
    %401 = arith.addf %398, %400 : vector<8x128xf32>
    %402 = arith.negf %401 : vector<8x128xf32>
    %403 = math.exp %402 : vector<8x128xf32>
    %cst_199 = arith.constant 1.000000e+00 : f32
    %404 = vector.broadcast %cst_199 : f32 to vector<8x128xf32>
    %405 = arith.addf %404, %403 : vector<8x128xf32>
    %406 = arith.divf %404, %405 : vector<8x128xf32>
    %407 = arith.index_cast %1 : i32 to index
    %c0_200 = arith.constant 0 : index
    %408 = vector.load %arg3[%407, %c0_200] : memref<8x128xf32, #tpu.memory_space<vmem>>, vector<8x128xf32>
    tpu.vector_store %arg3[%407, %c0_200], %406 {strides = array<i32>} : memref<8x128xf32, #tpu.memory_space<vmem>>, vector<8x128xf32>,
    %c1_i32 = arith.constant 1 : i32
    return
  }
  func.func @transform_0(%arg0: i32) -> (i32, i32, i32) {
    %c0_i32 = arith.constant 0 : i32
    %c0_i32_0 = arith.constant 0 : i32
    %c0_i32_1 = arith.constant 0 : i32
    %c0_i32_2 = arith.constant 0 : i32
    return %c0_i32, %c0_i32_0, %c0_i32_1 : i32, i32, i32
  }
  func.func @transform_1(%arg0: i32) -> (i32, i32, i32) {
    %c0_i32 = arith.constant 0 : i32
    %c0_i32_0 = arith.constant 0 : i32
    %c0_i32_1 = arith.constant 0 : i32
    return %c0_i32, %arg0, %c0_i32_0 : i32, i32, i32
  }
  func.func @transform_2(%arg0: i32) -> (i32, i32) {
    %c0_i32 = arith.constant 0 : i32
    %c0_i32_0 = arith.constant 0 : i32
    return %arg0, %c0_i32 : i32, i32
  }
}

</mosaic_0001>

<bundles_post_ra>
// kernel: mlp_forward.1
= control target key start
LH: loop header
LB: loop body
LE: loop exit
PB: predicated region body
PF: predicated region fallthrough
CT: control target
= control target key end

     0   :  { %s951_s0 = inlined_call_operand.vmem [shape: f32[87,8,128], index: 0, kind: input, shape index: {}]   ;;  %s952_s1 = inlined_call_operand.vmem [shape: f32[8,8,128], index: 1, kind: input, shape index: {}]   ;;  %s953_s2 = inlined_call_operand.vmem [shape: f32[8,128], index: 2, kind: output, shape index: {}]  }
   0x1   :  { %v602_v0 = vld [vmem:[%s952_s1] sm:$0xff]  ;;  %v607_v1 = vld [vmem:[%s952_s1 + $0x8] sm:$0xff]  ;;  %v612_v2 = vld [vmem:[%s952_s1 + $0x10] sm:$0xff] }
   0x2   :  { %v617_v3 = vld [vmem:[%s952_s1 + $0x18] sm:$0xff]  ;;  %v622_v4 = vld [vmem:[%s952_s1 + $0x20] sm:$0xff]  ;;  %v627_v5 = vld [vmem:[%s952_s1 + $0x28] sm:$0xff] }
   0x3   :  { %v33_v6 = vld [vmem:[%s951_s0] sm:$0xff]  ;;  %v635_v7 = vld [vmem:[%s952_s1 + $0x30] sm:$0xff]  ;;  %v650_v12 = vld [vmem:[%s952_s1 + $0x38] sm:$0xff] }
   0x4   :  { %v34_v8 = vmul.f32 %v33_v6, %v602_v0  ;;  %v443_v9 = vld [vmem:[%s951_s0 + $0x30] sm:$0xff]  ;;  %v444_v10 = vld [vmem:[%s951_s0 + $0x60] sm:$0xff]  ;;  %v452_v19 = vld [vmem:[%s951_s0 + $0x8] sm:$0xff] }
   0x5   :  { %v445_v11 = vld [vmem:[%s951_s0 + $0x90] sm:$0xff]  ;;  %v37_v13 = vmul.f32 %v443_v9, %v607_v1  ;;  %v41_v14 = vmul.f32 %v444_v10, %v612_v2  ;;  %v446_v15 = vld [vmem:[%s951_s0 + $0xc0] sm:$0xff]  ;;  %v74_v22 = vmul.f32 %v452_v19, %v602_v0  ;;  %v453_v23 = vld [vmem:[%s951_s0 + $0x38] sm:$0xff] }
   0x6   :  { %v447_v16 = vld [vmem:[%s951_s0 + $0xf0] sm:$0xff]  ;;  %v448_v17 = vld [vmem:[%s951_s0 + $0x120] sm:$0xff]  ;;  %v45_v21 = vmul.f32 %v445_v11, %v617_v3  ;;  %v454_v24 = vld [vmem:[%s951_s0 + $0x68] sm:$0xff]  ;;  %v49_v26 = vmul.f32 %v446_v15, %v622_v4  ;;  %v77_v28 = vmul.f32 %v453_v23, %v607_v1 }
   0x7   :  { %v449_v18 = vld [vmem:[%s951_s0 + $0x150] sm:$0xff]  ;;  %v38_v20 = vadd.f32 %v37_v13, %v34_v8  ;;  %v455_v25 = vld [vmem:[%s951_s0 + $0x98] sm:$0xff]  ;;  %v53_v27 = vmul.f32 %v447_v16, %v627_v5  ;;  %v81_v29 = vmul.f32 %v454_v24, %v612_v2  ;;  %v456_v30 = vld [vmem:[%s951_s0 + $0xc8] sm:$0xff]  ;;  %v57_v34 = vmul.f32 %v448_v17, %v635_v7 }
   0x8   :  { %v457_v31 = vld [vmem:[%s951_s0 + $0xf8] sm:$0xff]  ;;  %v458_v32 = vld [vmem:[%s951_s0 + $0x128] sm:$0xff]  ;;  %v61_v35 = vmul.f32 %v449_v18, %v650_v12  ;;  %v85_v36 = vmul.f32 %v455_v25, %v617_v3  ;;  %v462_v38 = vld [vmem:[%s951_s0 + $0x10] sm:$0xff]  ;;  %v78_v39 = vadd.f32 %v77_v28, %v74_v22  ;;  %v89_v40 = vmul.f32 %v456_v30, %v622_v4 }
   0x9   :  { %v42_v33 = vadd.f32 %v41_v14, %v38_v20  ;;  %v459_v37 = vld [vmem:[%s951_s0 + $0x158] sm:$0xff]  ;;  %v93_v41 = vmul.f32 %v457_v31, %v627_v5  ;;  %v114_v42 = vmul.f32 %v462_v38, %v602_v0  ;;  %v463_v43 = vld [vmem:[%s951_s0 + $0x40] sm:$0xff]  ;;  %v464_v44 = vld [vmem:[%s951_s0 + $0x70] sm:$0xff]  ;;  %v97_v47 = vmul.f32 %v458_v32, %v635_v7 }
   0xa   :  { %v465_v45 = vld [vmem:[%s951_s0 + $0xa0] sm:$0xff]  ;;  %v117_v48 = vmul.f32 %v463_v43, %v607_v1  ;;  %v121_v49 = vmul.f32 %v464_v44, %v612_v2  ;;  %v466_v50 = vld [vmem:[%s951_s0 + $0xd0] sm:$0xff]  ;;  %v82_v53 = vadd.f32 %v81_v29, %v78_v39  ;;  %v101_v54 = vmul.f32 %v459_v37, %v650_v12  ;;  %v472_v58 = vld [vmem:[%s951_s0 + $0x18] sm:$0xff] }
   0xb   :  { %v46_v46 = vadd.f32 %v45_v21, %v42_v33  ;;  %v467_v51 = vld [vmem:[%s951_s0 + $0x100] sm:$0xff]  ;;  %v468_v52 = vld [vmem:[%s951_s0 + $0x130] sm:$0xff]  ;;  %v125_v55 = vmul.f32 %v465_v45, %v617_v3  ;;  %v129_v56 = vmul.f32 %v466_v50, %v622_v4  ;;  %v154_v62 = vmul.f32 %v472_v58, %v602_v0  ;;  %v473_v63 = vld [vmem:[%s951_s0 + $0x48] sm:$0xff] }
   0xc   :  { %v469_v57 = vld [vmem:[%s951_s0 + $0x160] sm:$0xff]  ;;  %v118_v60 = vadd.f32 %v117_v48, %v114_v42  ;;  %v133_v61 = vmul.f32 %v467_v51, %v627_v5  ;;  %v474_v6 = vld [vmem:[%s951_s0 + $0x78] sm:$0xff]  ;;  %v475_v8 = vld [vmem:[%s951_s0 + $0xa8] sm:$0xff]  ;;  %v86_v9 = vadd.f32 %v85_v36, %v82_v53  ;;  %v137_v10 = vmul.f32 %v468_v52, %v635_v7 }
   0xd   :  { %v50_v59 = vadd.f32 %v49_v26, %v46_v46  ;;  %v157_v11 = vmul.f32 %v473_v63, %v607_v1  ;;  %v161_v13 = vmul.f32 %v474_v6, %v612_v2  ;;  %v476_v14 = vld [vmem:[%s951_s0 + $0xd8] sm:$0xff]  ;;  %v477_v15 = vld [vmem:[%s951_s0 + $0x108] sm:$0xff]  ;;  %v141_v18 = vmul.f32 %v469_v57, %v650_v12  ;;  %v482_v21 = vld [vmem:[%s951_s0 + $0x20] sm:$0xff] }
   0xe   :  { %v122_v17 = vadd.f32 %v121_v49, %v118_v60  ;;  %v165_v19 = vmul.f32 %v475_v8, %v617_v3  ;;  %v478_v20 = vld [vmem:[%s951_s0 + $0x138] sm:$0xff]  ;;  %v90_v22 = vadd.f32 %v89_v40, %v86_v9  ;;  %v169_v24 = vmul.f32 %v476_v14, %v622_v4  ;;  %v483_v26 = vld [vmem:[%s951_s0 + $0x50] sm:$0xff]  ;;  %v479_v31 = vld [vmem:[%s951_s0 + $0x168] sm:$0xff] }
   0xf   :  { %v54_v16 = vadd.f32 %v53_v27, %v50_v59  ;;  %v158_v23 = vadd.f32 %v157_v11, %v154_v62  ;;  %v173_v25 = vmul.f32 %v477_v15, %v627_v5  ;;  %v484_v27 = vld [vmem:[%s951_s0 + $0x80] sm:$0xff]  ;;  %v485_v28 = vld [vmem:[%s951_s0 + $0xb0] sm:$0xff]  ;;  %v194_v32 = vmul.f32 %v482_v21, %v602_v0  ;;  %v492_v48 = vld [vmem:[%s951_s0 + $0x28] sm:$0xff] }
  0x10   :  { %v126_v30 = vadd.f32 %v125_v55, %v122_v17  ;;  %v197_v33 = vmul.f32 %v483_v26, %v607_v1  ;;  %v486_v36 = vld [vmem:[%s951_s0 + $0xe0] sm:$0xff]  ;;  %v94_v38 = vadd.f32 %v93_v41, %v90_v22  ;;  %v201_v40 = vmul.f32 %v484_v27, %v612_v2  ;;  %v487_v42 = vld [vmem:[%s951_s0 + $0x110] sm:$0xff]  ;;  %v493_v41 = vld [vmem:[%s951_s0 + $0x58] sm:$0xff] }
  0x11   :  { %v58_v29 = vadd.f32 %v57_v34, %v54_v16  ;;  %v450_v37 = vld [vmem:[%s951_s0 + $0x180] sm:$0xff]  ;;  %v162_v39 = vadd.f32 %v161_v13, %v158_v23  ;;  %v177_v34 = vmul.f32 %v478_v20, %v635_v7  ;;  %v205_v46 = vmul.f32 %v485_v28, %v617_v3  ;;  %v460_v55 = vld [vmem:[%s951_s0 + $0x188] sm:$0xff] }
  0x12   :  { %v130_v44 = vadd.f32 %v129_v56, %v126_v30  ;;  %v198_v45 = vadd.f32 %v197_v33, %v194_v32  ;;  %v98_v49 = vadd.f32 %v97_v47, %v94_v38  ;;  %v181_v51 = vmul.f32 %v479_v31, %v650_v12  ;;  %v495_v47 = vld [vmem:[%s951_s0 + $0xb8] sm:$0xff]  ;;  %v488_v62 = vld [vmem:[%s951_s0 + $0x140] sm:$0xff]  ;;  %v496_v13 = vld [vmem:[%s951_s0 + $0xe8] sm:$0xff] }
  0x13   :  { %v62_v43 = vadd.f32 %v61_v35, %v58_v29  ;;  %v166_v50 = vadd.f32 %v165_v19, %v162_v39  ;;  %v209_v52 = vmul.f32 %v486_v36, %v622_v4  ;;  %v494_v35 = vld [vmem:[%s951_s0 + $0x88] sm:$0xff]  ;;  %v213_v58 = vmul.f32 %v487_v42, %v627_v5  ;;  %v497_v19 = vld [vmem:[%s951_s0 + $0x118] sm:$0xff]  ;;  %v490_v33 = vld [vmem:[%s951_s0 + $0x1a0] sm:$0xff] }
  0x14   :  { %v134_v56 = vadd.f32 %v133_v61, %v130_v44  ;;  %v202_v57 = vadd.f32 %v201_v40, %v198_v45  ;;  %v102_v59 = vadd.f32 %v101_v54, %v98_v49  ;;  %v234_v63 = vmul.f32 %v492_v48, %v602_v0  ;;  %v470_v54 = vld [vmem:[%s951_s0 + $0x190] sm:$0xff]  ;;  %v498_v26 = vld [vmem:[%s951_s0 + $0x148] sm:$0xff] }
  0x15   :  { %v65_v53 = vadd.f32 %v450_v37, %v62_v43  ;;  %v170_v60 = vadd.f32 %v169_v24, %v166_v50  ;;  %v237_v6 = vmul.f32 %v493_v41, %v607_v1  ;;  %v241_v11 = vmul.f32 %v494_v35, %v612_v2  ;;  %v489_v0 = vld [vmem:[%s951_s0 + $0x170] sm:$0xff]  ;;  %v500_v45 = vld [vmem:[%s951_s0 + $0x1a8] sm:$0xff] }
  0x16   :  { %v138_v9 = vadd.f32 %v137_v10, %v134_v56  ;;  %v206_v61 = vadd.f32 %v205_v46, %v202_v57  ;;  %v105_v14 = vadd.f32 %v460_v55, %v102_v59  ;;  %v245_v10 = vmul.f32 %v495_v47, %v617_v3  ;;  %v510_v56 = vld [vmem:[%s951_s0 + $0x1b8] sm:$0xff]  ;;  %v518_v57 = vld [vmem:[%s951_s0 + $0x1c0] sm:$0xff] }
  0x17   :  { %v451_v8 = vmul.f32 -1.442695, %v65_v53  ;;  %v174_v15 = vadd.f32 %v173_v25, %v170_v60  ;;  %v238_v1 = vadd.f32 %v237_v6, %v234_v63  ;;  %v217_v17 = vmul.f32 %v488_v62, %v635_v7  ;;  %v480_v25 = vld [vmem:[%s951_s0 + $0x198] sm:$0xff]  ;;  %v502_v53 = vld [vmem:[%s951_s0 + $0x1b0] sm:$0xff]  ;;  %v519_v6 = vld [vmem:[%s951_s0 + $0x1e0] sm:$0xff] }
  0x18   :  { %v142_v16 = vadd.f32 %v141_v18, %v138_v9  ;;  %v210_v2 = vadd.f32 %v209_v52, %v206_v61  ;;  %v461_v20 = vmul.f32 -1.442695, %v105_v14  ;;  %v249_v23 = vmul.f32 %v496_v13, %v622_v4  ;;  %v499_v4 = vld [vmem:[%s951_s0 + $0x178] sm:$0xff]  ;;  %v503_v60 = vld [vmem:[%s951_s0 + $0x1d0] sm:$0xff] }
  0x19   :  { %540 = vpow2.f32 %v451_v8  ;;  %v178_v21 = vadd.f32 %v177_v34, %v174_v15  ;;  %v242_v22 = vadd.f32 %v241_v11, %v238_v1  ;;  %v221_v18 = vmul.f32 %v489_v0, %v650_v12  ;;  %v511_v63 = vld [vmem:[%s951_s0 + $0x1d8] sm:$0xff]  ;;  %v527_v8 = vld [vmem:[%s951_s0 + $0x1e8] sm:$0xff]  ;;  %v504_v15 = vld [vmem:[%s951_s0 + $0x1f0] sm:$0xff] }
  0x1a   :  { %v145_v24 = vadd.f32 %v470_v54, %v142_v16  ;;  %v214_v3 = vadd.f32 %v213_v58, %v210_v2  ;;  %542 = vpow2.f32 %v461_v20  ;;  %v253_v29 = vmul.f32 %v497_v19, %v627_v5  ;;  %v526_v58 = vld [vmem:[%s951_s0 + $0x1c8] sm:$0xff]  ;;  %v512_v1 = vld [vmem:[%s951_s0 + $0x1f8] sm:$0xff]  ;;  %v520_v16 = vld [vmem:[%s951_s0 + $0x200] sm:$0xff] }
  0x1b   :  { %v182_v27 = vadd.f32 %v181_v51, %v178_v21  ;;  %v246_v28 = vadd.f32 %v245_v10, %v242_v22  ;;  %v257_v37 = vmul.f32 %v498_v26, %v635_v7  ;;  %v261_v5 = vmul.f32 %v499_v4, %v650_v12  ;;  %v528_v19 = vld [vmem:[%s951_s0 + $0x208] sm:$0xff]  ;;  %v513_v26 = vld [vmem:[%s951_s0 + $0x218] sm:$0xff] }
  0x1c   :  { %v471_v30 = vmul.f32 -1.442695, %v145_v24  ;;  %v218_v31 = vadd.f32 %v217_v17, %v214_v3  ;;  %v505_v3 = vld [vmem:[%s951_s0 + $0x210] sm:$0xff] }
  0x1d   :  { %v185_v32 = vadd.f32 %v480_v25, %v182_v27  ;;  %v250_v36 = vadd.f32 %v249_v23, %v246_v28  ;;  %v521_v28 = vld [vmem:[%s951_s0 + $0x220] sm:$0xff] }
  0x1e   :  { %544 = vpow2.f32 %v471_v30  ;;  %v222_v38 = vadd.f32 %v221_v18, %v218_v31  ;;  %v529_v30 = vld [vmem:[%s951_s0 + $0x228] sm:$0xff] }
  0x1f   :  { %v481_v39 = vmul.f32 -1.442695, %v185_v32  ;;  %v254_v34 = vadd.f32 %v253_v29, %v250_v36 }
  0x20   :  { %v225_v40 = vadd.f32 %v490_v33, %v222_v38 }
  0x21   :  { %546 = vpow2.f32 %v481_v39  ;;  %v258_v42 = vadd.f32 %v257_v37, %v254_v34  ;;  %v506_v37 = vld [vmem:[%s951_s0 + $0x230] sm:$0xff]  ;;  %v514_v39 = vld [vmem:[%s951_s0 + $0x238] sm:$0xff] }
  0x22   :  { %v491_v44 = vmul.f32 -1.442695, %v225_v40 }
  0x23   :  { %v541_v43 = vpop.eup %540  ;;  %v262_v48 = vadd.f32 %v261_v5, %v258_v42  ;;  %v522_v5 = vld [vmem:[%s951_s0 + $0x240] sm:$0xff] }
  0x24   :  { %v69_v46 = vadd.f32 1.0, %v541_v43  ;;  %548 = vpow2.f32 %v491_v44  ;;  %v543_v41 = vpop.eup %542  ;;  %v530_v43 = vld [vmem:[%s951_s0 + $0x248] sm:$0xff] }
  0x25   :  { %v265_v7 = vadd.f32 %v500_v45, %v262_v48  ;;  %v109_v49 = vadd.f32 1.0, %v543_v41 }
  0x26   :  { %550 = vrcp.f32 %v69_v46 }
  0x27   :  { %v501_v50 = vmul.f32 -1.442695, %v265_v7  ;;  %552 = vrcp.f32 %v109_v49 }
  0x28   :  { %v545_v51 = vpop.eup %544 }
  0x29   :  { %v149_v12 = vadd.f32 1.0, %v545_v51  ;;  %554 = vpow2.f32 %v501_v50  ;;  %v507_v51 = vld [vmem:[%s951_s0 + $0x250] sm:$0xff] }
  0x2b   :  { %v547_v52 = vpop.eup %546  ;;  %556 = vrcp.f32 %v149_v12 }
  0x2c   :  { %v189_v35 = vadd.f32 1.0, %v547_v52  ;;  %v515_v52 = vld [vmem:[%s951_s0 + $0x258] sm:$0xff] }
  0x2e   :  { %v549_v55 = vpop.eup %548  ;;  %558 = vrcp.f32 %v189_v35  ;;  %v523_v35 = vld [vmem:[%s951_s0 + $0x260] sm:$0xff] }
  0x2f   :  { %v229_v59 = vadd.f32 1.0, %v549_v55 }
  0x30   :  { %v551_v47 = vpop.eup %550 }
  0x31   :  { %v274_v62 = vmul.f32 %v551_v47, %v502_v53  ;;  %560 = vrcp.f32 %v229_v59  ;;  %v306_v9 = vmul.f32 %v551_v47, %v510_v56  ;;  %v338_v61 = vmul.f32 %v551_v47, %v518_v57  ;;  %v553_v13 = vpop.eup %552  ;;  %v531_v53 = vld [vmem:[%s951_s0 + $0x268] sm:$0xff] }
  0x32   :  { %v370_v11 = vmul.f32 %v551_v47, %v526_v58  ;;  %v277_v54 = vmul.f32 %v553_v13, %v503_v60  ;;  %v309_v0 = vmul.f32 %v553_v13, %v511_v63  ;;  %v341_v10 = vmul.f32 %v553_v13, %v519_v6  ;;  %v508_v60 = vld [vmem:[%s951_s0 + $0x270] sm:$0xff] }
  0x33   :  { %v555_v14 = vpop.eup %554  ;;  %v373_v2 = vmul.f32 %v553_v13, %v527_v8  ;;  %v516_v8 = vld [vmem:[%s951_s0 + $0x278] sm:$0xff] }
  0x34   :  { %v269_v17 = vadd.f32 1.0, %v555_v14  ;;  %v278_v21 = vadd.f32 %v277_v54, %v274_v62  ;;  %v310_v22 = vadd.f32 %v309_v0, %v306_v9  ;;  %v342_v23 = vadd.f32 %v341_v10, %v338_v61  ;;  %v524_v9 = vld [vmem:[%s951_s0 + $0x280] sm:$0xff]  ;;  %v532_v61 = vld [vmem:[%s951_s0 + $0x288] sm:$0xff] }
  0x35   :  { %v557_v20 = vpop.eup %556  ;;  %v374_v24 = vadd.f32 %v373_v2, %v370_v11 }
  0x36   :  { %562 = vrcp.f32 %v269_v17  ;;  %v281_v25 = vmul.f32 %v557_v20, %v504_v15  ;;  %v313_v18 = vmul.f32 %v557_v20, %v512_v1  ;;  %v345_v27 = vmul.f32 %v557_v20, %v520_v16 }
  0x37   :  { %v377_v29 = vmul.f32 %v557_v20, %v528_v19 }
  0x38   :  { %v559_v31 = vpop.eup %558  ;;  %v282_v4 = vadd.f32 %v281_v25, %v278_v21  ;;  %v314_v32 = vadd.f32 %v313_v18, %v310_v22  ;;  %v346_v33 = vadd.f32 %v345_v27, %v342_v23  ;;  %v535_v27 = vld [vmem:[%s951_s0 + $0x298] sm:$0xff] }
  0x39   :  { %v285_v36 = vmul.f32 %v559_v31, %v505_v3  ;;  %v317_v38 = vmul.f32 %v559_v31, %v513_v26  ;;  %v349_v34 = vmul.f32 %v559_v31, %v521_v28  ;;  %v378_v40 = vadd.f32 %v377_v29, %v374_v24  ;;  %v534_v26 = vld [vmem:[%s951_s0 + $0x290] sm:$0xff]  ;;  %v536_v29 = vld [vmem:[%s951_s0 + $0x2a0] sm:$0xff] }
  0x3a   :  { %v381_v42 = vmul.f32 %v559_v31, %v529_v30 }
  0x3b   :  { %v561_v44 = vpop.eup %560  ;;  %v286_v45 = vadd.f32 %v285_v36, %v282_v4  ;;  %v318_v46 = vadd.f32 %v317_v38, %v314_v32  ;;  %v350_v48 = vadd.f32 %v349_v34, %v346_v33  ;;  %v537_v4 = vld [vmem:[%s951_s0 + $0x2a8] sm:$0xff] }
  0x3c   :  { %v289_v41 = vmul.f32 %v561_v44, %v506_v37  ;;  %v321_v7 = vmul.f32 %v561_v44, %v514_v39  ;;  %v353_v49 = vmul.f32 %v561_v44, %v522_v5  ;;  %v382_v50 = vadd.f32 %v381_v42, %v378_v40  ;;  %v538_v5 = vld [vmem:[%s951_s0 + $0x2b0] sm:$0xff] }
  0x3d   :  { %v385_v12 = vmul.f32 %v561_v44, %v530_v43 }
  0x3e   :  { %v290_v55 = vadd.f32 %v289_v41, %v286_v45  ;;  %v322_v56 = vadd.f32 %v321_v7, %v318_v46  ;;  %v354_v57 = vadd.f32 %v353_v49, %v350_v48 }
  0x3f   :  { %v386_v58 = vadd.f32 %v385_v12, %v382_v50 }
  0x40   :  { %v563_v47 = vpop.eup %562 }
  0x41   :  { %v293_v59 = vmul.f32 %v563_v47, %v507_v51  ;;  %v325_v62 = vmul.f32 %v563_v47, %v515_v52  ;;  %v357_v63 = vmul.f32 %v563_v47, %v523_v35  ;;  %v389_v6 = vmul.f32 %v563_v47, %v531_v53 }
  0x43   :  { %v294_v11 = vadd.f32 %v293_v59, %v290_v55  ;;  %v326_v13 = vadd.f32 %v325_v62, %v322_v56  ;;  %v358_v14 = vadd.f32 %v357_v63, %v354_v57  ;;  %v390_v54 = vadd.f32 %v389_v6, %v386_v58 }
  0x45   :  { %v297_v15 = vadd.f32 %v508_v60, %v294_v11  ;;  %v329_v0 = vadd.f32 %v516_v8, %v326_v13  ;;  %v361_v1 = vadd.f32 %v524_v9, %v358_v14  ;;  %v393_v10 = vadd.f32 %v532_v61, %v390_v54 }
  0x47   :  { %v509_v16 = vmul.f32 -1.442695, %v297_v15  ;;  %v517_v2 = vmul.f32 -1.442695, %v329_v0  ;;  %v525_v17 = vmul.f32 -1.442695, %v361_v1 }
  0x48   :  { %v533_v19 = vmul.f32 -1.442695, %v393_v10 }
  0x49   :  { %564 = vpow2.f32 %v509_v16 }
  0x4a   :  { %566 = vpow2.f32 %v517_v2 }
  0x4b   :  { %568 = vpow2.f32 %v525_v17 }
  0x4c   :  { %570 = vpow2.f32 %v533_v19 }
  0x53   :  { %v565_v20 = vpop.eup %564 }
  0x54   :  { %v567_v21 = vpop.eup %566  ;;  %v301_v22 = vadd.f32 1.0, %v565_v20 }
  0x55   :  { %v569_v23 = vpop.eup %568  ;;  %v333_v24 = vadd.f32 1.0, %v567_v21 }
  0x56   :  { %v571_v25 = vpop.eup %570  ;;  %572 = vrcp.f32 %v301_v22  ;;  %v365_v3 = vadd.f32 1.0, %v569_v23 }
  0x57   :  { %574 = vrcp.f32 %v333_v24  ;;  %v397_v18 = vadd.f32 1.0, %v571_v25 }
  0x58   :  { %576 = vrcp.f32 %v365_v3 }
  0x59   :  { %578 = vrcp.f32 %v397_v18 }
  0x60   :  { %v573_v28 = vpop.eup %572 }
  0x61   :  { %v575_v30 = vpop.eup %574  ;;  %v402_v31 = vmul.f32 %v573_v28, %v534_v26 }
  0x62   :  { %v577_v32 = vpop.eup %576  ;;  %v405_v33 = vmul.f32 %v575_v30, %v535_v27 }
  0x63   :  { %v579_v36 = vpop.eup %578  ;;  %v409_v37 = vmul.f32 %v577_v32, %v536_v29 }
  0x64   :  { %v406_v38 = vadd.f32 %v405_v33, %v402_v31  ;;  %v413_v39 = vmul.f32 %v579_v36, %v537_v4 }
  0x66   :  { %v410_v34 = vadd.f32 %v409_v37, %v406_v38 }
  0x68   :  { %v414_v40 = vadd.f32 %v413_v39, %v410_v34 }
  0x6a   :  { %v417_v42 = vadd.f32 %v538_v5, %v414_v40 }
  0x6c   :  { %v539_v43 = vmul.f32 -1.442695, %v417_v42 }
  0x6e   :  { %580 = vpow2.f32 %v539_v43 }
  0x78   :  { %v581_v44 = vpop.eup %580 }
  0x79   :  { %v421_v45 = vadd.f32 1.0, %v581_v44 }
  0x7b   :  { %582 = vrcp.f32 %v421_v45 }
  0x85   :  { %v583_v46 = vpop.eup %582 }
  0x86   :  { %424 = vst [vmem:[%s953_s2] sm:$0xff] %v583_v46 }

</bundles_post_ra>
